<compile_context>
chip_gen: v7x
topology: tpu7x:2x2x1
jax: 0.10.0
libtpu: 0.0.40
codegen_flags: <defaults>
</compile_context>

<pallas_src>
import functools
import math

import jax
import jax.numpy as jnp
from jax.experimental import pallas as pl
from jax.experimental.pallas import tpu as pltpu


# ---------------------------------------------------------------------------
# VMEM-aware tile sizing
# ---------------------------------------------------------------------------

def _vmem_budget_bytes() -> int:
    """Usable VMEM budget (chip-aware: ~48 MiB on v7x, ~96 MiB on v5e/v6e)."""
    try:
        cap = int(pltpu.get_tpu_info().vmem_capacity_bytes)
    except Exception:
        cap = 64 * 1024 * 1024  # conservative (v7x-sized) fallback
    return cap * 3 // 4


def _target_tile_elems(itemsize: int) -> int:
    # budget / 8: 2x double-buffered input + 2x double-buffered output tiles
    # plus f32 compute intermediates and headroom.
    return max(_vmem_budget_bytes() // 8 // itemsize, 1024)


# ---------------------------------------------------------------------------
# Kernels
# ---------------------------------------------------------------------------

def _taylor_poly(x, n: int):
    """fn(x) = 1 + x + x^2/2! + ... + x^n/n!, evaluated in Horner form (f32)."""
    if n == 0:
        return jnp.ones_like(x)
    coeffs = [1.0 / math.factorial(i) for i in range(n + 1)]
    fn = x * coeffs[n] + coeffs[n - 1]
    for i in range(n - 2, -1, -1):
        fn = fn * x + coeffs[i]
    return fn


def _taylor_softmax_mid_kernel(x_ref, o_ref, *, n: int):
    """One (BL, C, TL) tile: reduction over the middle (channel/sublane) axis."""
    x = x_ref[...].astype(jnp.float32)
    fn = _taylor_poly(x, n)
    denom = jnp.sum(fn, axis=1, keepdims=True)            # (BL, 1, TL)
    # approx=False keeps exact-division parity with the PyTorch reference.
    o_ref[...] = (fn * pl.reciprocal(denom, approx=False)).astype(o_ref.dtype)


def _taylor_softmax_last_kernel(x_ref, o_ref, *, n: int):
    """One (TR, C) tile: reduction over the last (lane) axis (fallback path)."""
    x = x_ref[...].astype(jnp.float32)
    fn = _taylor_poly(x, n)
    denom = jnp.sum(fn, axis=-1, keepdims=True)            # (TR, 1)
    o_ref[...] = (fn * pl.reciprocal(denom, approx=False)).astype(o_ref.dtype)


# ---------------------------------------------------------------------------
# Drivers
# ---------------------------------------------------------------------------

def _taylor_softmax_mid(x3d: jax.Array, n: int) -> jax.Array:
    """x3d: (lead, C, trail), reduction over the middle axis. Native layout."""
    lead, c, trail = x3d.shape
    target_elems = _target_tile_elems(x3d.dtype.itemsize)

    # Lane tile: as large as the budget allows; multiple of 128 or full trail.
    tl = max(target_elems // max(c, 1), 128)
    if tl >= trail:
        tl = trail                               # full extent is always legal
    else:
        tl = (tl // 128) * 128

    # Lead tile: spend the remaining budget, but keep >= 2 grid steps so both
    # v7x TensorCores get work.
    bl = max(1, min(lead, target_elems // max(c * tl, 1)))
    if lead > 1:
        bl = min(bl, pl.cdiv(lead, 2))

    grid = (pl.cdiv(lead, bl), pl.cdiv(trail, tl))
    kernel = functools.partial(_taylor_softmax_mid_kernel, n=n)
    return pl.pallas_call(
        kernel,
        out_shape=jax.ShapeDtypeStruct(x3d.shape, x3d.dtype),
        grid_spec=pltpu.PrefetchScalarGridSpec(
            num_scalar_prefetch=0,
            grid=grid,
            in_specs=[pl.BlockSpec((bl, c, tl), lambda i, j: (i, 0, j))],
            out_specs=pl.BlockSpec((bl, c, tl), lambda i, j: (i, 0, j)),
        ),
        compiler_params=pltpu.CompilerParams(
            dimension_semantics=("parallel", "parallel"),
            vmem_limit_bytes=_vmem_budget_bytes(),
        ),
    )(x3d)


def _taylor_softmax_last(x2d: jax.Array, n: int) -> jax.Array:
    """x2d: (rows, C), reduction over the last axis (dim == last-axis fallback)."""
    rows, c = x2d.shape
    target_elems = _target_tile_elems(x2d.dtype.itemsize)

    tr = min(rows, max(8, (target_elems // max(c, 1) // 8) * 8))
    grid = (pl.cdiv(rows, tr),)
    kernel = functools.partial(_taylor_softmax_last_kernel, n=n)
    return pl.pallas_call(
        kernel,
        out_shape=jax.ShapeDtypeStruct(x2d.shape, x2d.dtype),
        grid_spec=pltpu.PrefetchScalarGridSpec(
            num_scalar_prefetch=0,
            grid=grid,
            in_specs=[pl.BlockSpec((tr, c), lambda i: (i, 0))],
            out_specs=pl.BlockSpec((tr, c), lambda i: (i, 0)),
        ),
        compiler_params=pltpu.CompilerParams(
            dimension_semantics=("parallel",),
            vmem_limit_bytes=_vmem_budget_bytes(),
        ),
    )(x2d)


def taylor_softmax(x: jax.Array, dim: int = 1, n: int = 2) -> jax.Array:
    """Matches TaylorSoftmax(dim, n).forward(x) for any-rank input (no transposes)."""
    assert n % 2 == 0, "n must be even"
    ndim = x.ndim
    dim = dim % ndim
    shape = x.shape
    c = shape[dim]
    lead = math.prod(shape[:dim])
    trail = math.prod(shape[dim + 1:])

    if trail == 1:
        # Reduction axis is already the last (lane) axis.
        out = _taylor_softmax_last(x.reshape(lead, c), n)
    else:
        # Native layout: keep the trailing spatial dims lane-dense, reduce over
        # the channel axis on sublanes. Reshapes below are free views.
        out = _taylor_softmax_mid(x.reshape(lead, c, trail), n)
    return out.reshape(shape)


# ---------------------------------------------------------------------------
# Reference + test
# ---------------------------------------------------------------------------

def _reference(x, dim=1, n=2):
    fn = jnp.ones_like(x)
    denor = 1.0
    for i in range(1, n + 1):
        denor *= i
        fn = fn + x ** i / denor
    return fn / jnp.sum(fn, axis=dim, keepdims=True)


if __name__ == "__main__":
    key = jax.random.PRNGKey(0)
    # NCHW input, softmax over channels (module default dim=1, n=2).
    x = jax.random.normal(key, (2, 4, 16, 16), dtype=jnp.float32)

    out = jax.block_until_ready(taylor_softmax(x, dim=1, n=2))
    ref = _reference(x, dim=1, n=2)
    assert out.shape == x.shape and out.dtype == x.dtype
    assert jnp.allclose(out, ref, atol=1e-5, rtol=1e-5)

    # Exercise the last-dim fallback path and n=4.
    x2 = jax.random.normal(jax.random.PRNGKey(1), (8, 32), dtype=jnp.float32)
    out2 = jax.block_until_ready(taylor_softmax(x2, dim=-1, n=4))
    ref2 = _reference(x2, dim=-1, n=4)
    assert jnp.allclose(out2, ref2, atol=1e-5, rtol=1e-5)

    print("KERNEL_OK")
</pallas_src>

<mosaic_0001>
module attributes {stable_mosaic.version = 11 : i64} {
  func.func @_taylor_softmax_mid_kernel(%arg0: i32, %arg1: i32, %arg2: memref<1x4x256xf32, #tpu.memory_space<vmem>>, %arg3: memref<1x4x256xf32, #tpu.memory_space<vmem>>) attributes {dimension_semantics = [#tpu.dimension_semantics<parallel>, #tpu.dimension_semantics<parallel>], iteration_bounds = array<i64: 2, 1>, scalar_prefetch = 0 : i64, scratch_operands = 0 : i64, tpu.core_type = #tpu.core_type<tc>, window_params = [{transform_indices = @transform_0, window_bounds = array<i64: 1, 4, 256>}, {transform_indices = @transform_1, window_bounds = array<i64: 1, 4, 256>}]} {
    %c0 = arith.constant 0 : index
    %c0_0 = arith.constant 0 : index
    %c0_1 = arith.constant 0 : index
    %0 = vector.load %arg2[%c0, %c0_0, %c0_1] : memref<1x4x256xf32, #tpu.memory_space<vmem>>, vector<1x4x256xf32>
    %cst = arith.constant 5.000000e-01 : f32
    %1 = vector.broadcast %cst : f32 to vector<1x4x256xf32>
    %2 = arith.mulf %0, %1 : vector<1x4x256xf32>
    %cst_2 = arith.constant 1.000000e+00 : f32
    %3 = vector.broadcast %cst_2 : f32 to vector<1x4x256xf32>
    %4 = arith.addf %2, %3 : vector<1x4x256xf32>
    %5 = arith.mulf %4, %0 : vector<1x4x256xf32>
    %cst_3 = arith.constant 1.000000e+00 : f32
    %6 = vector.broadcast %cst_3 : f32 to vector<1x4x256xf32>
    %7 = arith.addf %5, %6 : vector<1x4x256xf32>
    %cst_4 = arith.constant dense<0.000000e+00> : vector<1x256xf32>
    %8 = vector.multi_reduction <add>, %7, %cst_4 [1] : vector<1x4x256xf32> to vector<1x256xf32>
    %9 = vector.shape_cast %8 : vector<1x256xf32> to vector<1x1x256xf32>
    %10 = tpu.reciprocal %9 : vector<1x1x256xf32> -> vector<1x1x256xf32>
    %11 = vector.broadcast %10 : vector<1x1x256xf32> to vector<1x4x256xf32>
    %12 = arith.mulf %7, %11 : vector<1x4x256xf32>
    %c0_5 = arith.constant 0 : index
    %c0_6 = arith.constant 0 : index
    %c0_7 = arith.constant 0 : index
    %13 = vector.load %arg3[%c0_5, %c0_6, %c0_7] : memref<1x4x256xf32, #tpu.memory_space<vmem>>, vector<1x4x256xf32>
    tpu.vector_store %arg3[%c0_5, %c0_6, %c0_7], %12 {strides = array<i32>} : memref<1x4x256xf32, #tpu.memory_space<vmem>>, vector<1x4x256xf32>,
    return
  }
  func.func @transform_0(%arg0: i32, %arg1: i32) -> (i32, i32, i32) {
    %c0_i32 = arith.constant 0 : i32
    %c0_i32_0 = arith.constant 0 : i32
    return %arg0, %c0_i32, %arg1 : i32, i32, i32
  }
  func.func @transform_1(%arg0: i32, %arg1: i32) -> (i32, i32, i32) {
    %c0_i32 = arith.constant 0 : i32
    %c0_i32_0 = arith.constant 0 : i32
    return %arg0, %c0_i32, %arg1 : i32, i32, i32
  }
}

</mosaic_0001>

<bundles_post_ra>
// kernel: tpu_custom_call.1
= control target key start
LH: loop header
LB: loop body
LE: loop exit
PB: predicated region body
PF: predicated region fallthrough
CT: control target
= control target key end

     0   :  { %6 = vsyncpa [#allocation3], 0  ;;  %s666_s0 = inlined_call_operand.hbm [shape: f32[2,4,256], index: 0, kind: input, shape index: {}]   ;;  %s667_s1 = inlined_call_operand.hbm [shape: f32[2,4,256], index: 1, kind: output, shape index: {}]  }
   0x1   :  { %8 = vsyncpa [#allocation3 + $0x1], 0 }
   0x2   :  { %9 = vsyncpa [#allocation4], 0 }
   0x3   :  { %11 = vsyncpa [#allocation4 + $0x1], 0  ;;  %s494_s6 = smov 0   ;;  %s496_s7 = smov 0  }
   0x4   :  { %s498_s8 = smov 0   ;;  %s500_s9 = smov 0  }
   0x5   :  { %s502_s10 = smov 0   ;;  %s504_s11 = smov 0  }
   0x6 LB: > { %s285_s12 = sadd.s32 4294967295, %s480_s11   ;;  %s286_s13 = sadd.s32 4294967294, %s480_s11   ;;  %s480_s11 = sphi %s504_s11, %s17_s11   ;;  %s476_s10 = sphi %s502_s10, %s683_s10   ;;  %s472_s9 = sphi %s500_s9, %s682_s9   ;;  %s468_s8 = sphi %s498_s8, %s681_s8   ;;  %s464_s7 = sphi %s496_s7, %s680_s7   ;;  %s460_s6 = sphi %s494_s6, %s679_s6  }
   0x7   : > { %s29_s14 = sadd.s32 1, %s476_s10  ;;  %s38_s15 = sadd.s32 1, %s468_s8 }
   0x8   : > { %p31_p0 = scmp.ge.s32.totalorder %s29_s14, 2  ;;  %p45_p1 = scmp.ne.s32.totalorder %s468_s8, %s464_s7 }
   0x9   : > { %p46_p2 = scmp.eq.s32.totalorder %s480_s11, 0  ;;  %p51_p3 = scmp.ne.s32.totalorder %s464_s7, %s460_s6 }
   0xa   : > { %s685_s14 = smov (%p31_p0, %s29_s14), 0  ;;  %p52_p5 = scmp.eq.s32.totalorder %s285_s12, 0 }
   0xb   : > { %p535_p4 = por %p46_p2, %p45_p1  ;;  %s33_s17 = ssub.s32 %s476_s10, %s685_s14 }
   0xc   : > { %p77_p6 = scmp.eq.s32.totalorder %s285_s12, 1  ;;  %p36_p7 = scmp.eq.s32.totalorder %s33_s17, 0 }
   0xd   : > { %p541_p8 = por %p52_p5, %p51_p3  ;;  %p83_p10 = scmp.eq.s32.totalorder %s286_s13, 1 }
   0xe   : > { %p545_p9 = por %p77_p6, %p45_p1  ;;  %p314_p13 = scmp.lt.s32.totalorder %s480_s11, 2 }
   0xf   : > { %s550_s20 = scalar_select %p36_p7, %s468_s8, %s38_s15  }
  0x10   : > { %s671_s19 = scalar_select %p545_p9, 1, 0 }
  0x11   : > { %p552_p11 = por %p83_p10, %p51_p3  ;;  %s103_s22 = sand.u32 1, %s468_s8  }
  0x12   : > { %s289_s23 = sshll.u32 %s103_s22, 3  ;;  %s300_s24 = sshll.u32 %s476_s10, 7 }
  0x13   : > { %s672_s21 = scalar_select %p552_p11, 1, 0 }
  0x14   : > { %s563_s27 = scalar_lea.hbm %s666_s0, %s300_s24  ;;  %s107_s28 = scalar_lea.vmem [#allocation2], %s289_s23 }
  0x15   : > { %s117_s29 = sshll.u32 %s107_s28, 4  ;;  %p569_p0 = pnand %p314_p13, %p535_p4  ;;  %s565_s29 = int_to_ptr.vmem [resolvable:$true] %s117_s29 }
  0x16   : > { %s104_s2 = scalar_lea.sflag [#allocation3], %s103_s22  ;;  %s368_s3 = scalar_lea.hbm %s563_s27, 128 }
  0x17   : > { %p369_p3 = scmp.ne.s32.totalorder %s563_s27, %s368_s3  ;;  %p370_p5 = pneg %p569_p0 }
  0x18   : > { %s373_s12 = scalar_lea.hbm %s666_s0, 256  ;;  %p374_p4 = scmp.lt.u32.totalorder %s563_s27, %s666_s0 }
  0x19   : > { %p371_p6 = pnand %p370_p5, %p369_p3  ;;  %p375_p10 = scmp.lt.u32.totalorder %s373_s12, %s368_s3 }
  0x1a   : > { %p377_p12 = scmp.lt.u32.totalorder %s368_s3, %s563_s27 }
  0x1b   : > { %p372_p7 = pneg %p371_p6  ;;  %p376_p13 = por %p375_p10, %p374_p4 }
  0x1d   : > { %p378_p1 = por %p377_p12, %p376_p13 }
  0x1f   : > { %p379_p2 = pnand %p378_p1, %p372_p7 }
  0x21   : > { %382 = shalt.err (!%p379_p2)
}
  0x22   : > { %s383_s16 = scalar_lea.vmem %s565_s29, 128  ;;  %s482_s17 = smov [#allocation2]  }
  0x23   : > { %p384_p3 = scmp.ne.s32.totalorder %s565_s29, %s383_s16  ;;  %s388_s22 = sshll.u32 %s482_s17, 4  ;;  %s389_s22 = int_to_ptr.vmem [resolvable:$false] %s388_s22 }
  0x24   : > { %s390_s23 = scalar_lea.vmem %s389_s22, 256  ;;  %p391_p9 = scmp.lt.s32.totalorder %s565_s29, %s389_s22 }
  0x25   : > { %p386_p6 = pnand %p384_p3, %p370_p5  ;;  %p392_p4 = scmp.lt.s32.totalorder %s390_s23, %s383_s16 }
  0x27   : > { %p387_p11 = pneg %p386_p6  ;;  %p393_p10 = por %p392_p4, %p391_p9 }
  0x29   : > { %p394_p12 = pnand %p393_p10, %p387_p11 }
  0x2b   : > { %397 = shalt.err (!%p394_p12)
}
  0x2c   : > { %309 = dma.hbm_to_vmem [thread:$0]  (!%p569_p0), %s563_s27, 128, %s565_s29, %s104_s2  }
  0x2d   : > { %p674_p1 = scmp.lt.s32.totalorder %s480_s11, 3  ;;  %p675_p2 = scmp.ge.s32.totalorder %s480_s11, 1 }
  0x2f   : > { %p123_p5 = pnand %p675_p2, %p674_p1 }
  0x30   : > { %s605_s24 = sand.u32 (!%p123_p5), 1, %s464_s7  }
  0x31   : > { %126 = sbr.rel (%p123_p5) target bundleno = 110 (0x6e), region = 24  ;;  %s293_s25 = sshll.u32 (!%p123_p5), %s605_s24, 3 }
  0x32   : > { %s129_s26 = scalar_lea.sflag (!%p123_p5), [#allocation3], %s605_s24  ;;  %s132_s28 = scalar_lea.vmem (!%p123_p5), [#allocation2], %s293_s25 }
  0x38   : > { %451 = dma.done.wait (%p541_p8), %s129_s26, 128  }
  0x39   : > { %453 = vsyncadd (%p541_p8), %s129_s26, 4294967168  ;;  %v153_v0 = vld [vmem:[%s132_s28] sm:$0xff]  ;;  %vm161_vm0 = vcmask 1043456   ;;  %s150_s18 = scalar_lea.vmem [#allocation5], %s293_s25  ;;  %s301_s29 = sshll.u32 %s472_s9, 7 }
  0x3a   : > { %v154_v1 = vmul.f32 0.5, %v153_v0  ;;  %s201_s27 = sshll.u32 %s150_s18, 4  ;;  %s619_s3 = scalar_lea.hbm %s667_s1, %s301_s29  ;;  %s614_s27 = int_to_ptr.vmem [resolvable:$true] %s201_s27 }
  0x3b   : > { %s185_s4 = scalar_lea.sflag [#allocation4], %s605_s24  ;;  %s398_s5 = scalar_lea.vmem %s614_s27, 128 }
  0x3c   : > { %v155_v2 = vadd.f32 1.0, %v154_v1  ;;  %p399_p8 = scmp.ne.s32.totalorder %s614_s27, %s398_s5  ;;  %p676_p9 = scmp.ne.s32.totalorder %s671_s19, 0 }
  0x3d   : > { %s483_s9 = smov [#allocation5]  }
  0x3e   : > { %v156_v3 = vmul.f32 %v155_v2, %v153_v0  ;;  %p400_p11 = pnand %p399_p8, %p676_p9  ;;  %s402_s12 = sshll.u32 %s483_s9, 4  ;;  %s403_s12 = int_to_ptr.vmem [resolvable:$false] %s402_s12 }
  0x3f   : > { %s404_s13 = scalar_lea.vmem %s403_s12, 256  ;;  %p405_p7 = scmp.lt.s32.totalorder %s614_s27, %s403_s12 }
  0x40   : > { %v157_v4 = vadd.f32 1.0, %v156_v3  ;;  %p401_p0 = pneg %p400_p11  ;;  %p406_p13 = scmp.lt.s32.totalorder %s404_s13, %s398_s5 }
  0x42   : > { %v159_v5 = vcombine.high %v157_v4, %v157_v4  ;;  %v162_v6 = vsel %vm161_vm0, %v157_v4, 0.0  ;;  %p407_p3 = por %p406_p13, %p405_p7 }
  0x43   : > { %v163_v7 = vrot.slane %v162_v6, 4 }
  0x44   : > { %v169_v8 = vsel %vm161_vm0, %v159_v5, 0.0  ;;  %p408_p6 = pnand %p407_p3, %p401_p0 }
  0x45   : > { %v164_v9 = vadd.f32 %v163_v7, %v162_v6  ;;  %v170_v10 = vrot.slane %v169_v8, 4 }
  0x47   : > { %v165_v11 = vrot.slane %v164_v9, 2  ;;  %v171_v12 = vadd.f32 %v170_v10, %v169_v8 }
  0x49   : > { %v166_v13 = vadd.f32 %v165_v11, %v164_v9  ;;  %v172_v14 = vrot.slane %v171_v12, 2 }
  0x4b   : > { %v167_v15 = vrot.slane %v166_v13, 1  ;;  %v173_v16 = vadd.f32 %v172_v14, %v171_v12 }
  0x4d   : > { %v168_v17 = vadd.f32 %v167_v15, %v166_v13  ;;  %v174_v18 = vrot.slane %v173_v16, 1 }
  0x4f   : > { %v175_v19 = vadd.f32 %v174_v18, %v173_v16  ;;  %364 = vrcp.f32 %v168_v17 }
  0x51   : > { %366 = vrcp.f32 %v175_v19 }
  0x59   : > { %v365_v20 = vpop.eup %364 }
  0x5b   : > { %v367_v21 = vpop.eup %366 }
  0x5c   : > { %v180_v22 = vcombine.low %v365_v20, %v367_v21 }
  0x5e   : > { %v182_v23 = vmul.f32 %v180_v22, %v157_v4 }
  0x60   : > { %183 = vst [vmem:[%s150_s18] sm:$0xff] %v182_v23 }
  0x61   : > { %411 = shalt.err (!%p408_p6)
}
  0x62   : > { %s412_s15 = scalar_lea.hbm %s619_s3, 128  ;;  %s416_s22 = scalar_lea.hbm %s667_s1, 256 }
  0x63   : > { %p413_p4 = scmp.ne.s32.totalorder %s619_s3, %s412_s15  ;;  %p417_p1 = scmp.lt.u32.totalorder %s619_s3, %s667_s1 }
  0x64   : > { %p418_p2 = scmp.lt.u32.totalorder %s416_s22, %s412_s15  ;;  %p420_p8 = scmp.lt.u32.totalorder %s412_s15, %s619_s3 }
  0x65   : > { %p414_p10 = pnand %p413_p4, %p676_p9 }
  0x66   : > { %p419_p5 = por %p418_p2, %p417_p1 }
  0x67   : > { %p415_p12 = pneg %p414_p10 }
  0x68   : > { %p421_p11 = por %p420_p8, %p419_p5 }
  0x6a   : > { %p422_p0 = pnand %p421_p11, %p415_p12 }
  0x6c   : > { %425 = shalt.err (!%p422_p0)
}
  0x6d   : > { %304 = dma.vmem_to_hbm [thread:$0]  (%p676_p9), %s614_s27, 128, %s619_s3, %s185_s4  }
  0x6e PF: > { %s213_s25 = sand.u32 1, %s460_s6   ;;  %p677_p7 = scmp.ne.s32.totalorder %s672_s21, 0 }
  0x6f   : > { %p678_p13 = scmp.ge.s32.totalorder %s480_s11, 2  ;;  %s214_s26 = scalar_lea.sflag [#allocation4], %s213_s25 }
  0x71   : > { %p311_p3 = pnand %p678_p13, %p677_p7 }
  0x73   : > { %455 = dma.done.wait (!%p311_p3), %s214_s26, 128  }
  0x74   : > { %457 = vsyncadd (!%p311_p3), %s214_s26, 4294967168  ;;  %s17_s11 = sadd.s32 1, %s480_s11   ;;  %s679_s6 = smov %s464_s7 }
  0x75   : > { %p14_p6 = scmp.ge.s32.totalorder %s17_s11, 4   ;;  %s680_s7 = smov %s468_s8 }
  0x76   : > { %s681_s8 = smov %s550_s20  ;;  %s682_s9 = smov %s476_s10 }
  0x77   : > { %s683_s10 = smov %s685_s14  ;;  %16 = sbr.rel (!%p14_p6) target bundleno = 6 (0x6), region = 69 }
  0x7e   :  { %219 = vsyncpa [#allocation3], 1 }
  0x7f   :  { %221 = vsyncpa [#allocation3 + $0x1], 1 }
  0x80   :  { %222 = vsyncpa [#allocation4], 1 }
  0x81   :  { %224 = vsyncpa [#allocation4 + $0x1], 1 }

</bundles_post_ra>
